<compile_context>
chip_gen: v7x
topology: tpu7x:2x2x1
jax: 0.10.0
libtpu: 0.0.40
codegen_flags: <defaults>
</compile_context>

<pallas_src>
import functools

import jax
import jax.numpy as jnp
from jax.experimental import pallas as pl
from jax.experimental.pallas import tpu as pltpu


def _round_up(x, m):
    return (x + m - 1) // m * m


def _vmem_budget_bytes():
    """~70% of this generation's per-core VMEM (v5e/v6e 128 MiB, v7x 64 MiB)."""
    try:
        cap = pltpu.get_tpu_info().vmem_capacity_bytes
    except Exception:
        cap = 64 * 1024 * 1024          # conservative fallback (v7x-sized)
    return int(cap * 0.7)


def _select_tiles(M, K, N, tile_m, budget):
    """Pick (tm, tn): tm mult. of 8, tn mult. of 128, double-buffered fit in budget."""
    n_al = _round_up(N, 128)                                 # lane-aligned tn ceiling
    tm = max(8, min(_round_up(tile_m, 8), _round_up(M, 8)))
    # v7x has 2 TensorCores: keep >= 2 "parallel" M steps when there is enough work.
    if M > 256 and pl.cdiv(M, tm) < 2:
        tm = _round_up(pl.cdiv(M, 2), 256)

    def footprint(tm_, tn_):                                  # double-buffered f32 bytes
        return 8 * (tm_ * K + K * tn_ + tn_ + tm_ * tn_)

    # If even tn=128 does not fit (huge K), shrink tm first.
    while tm > 8 and footprint(tm, min(128, n_al)) > budget:
        tm = max(8, _round_up(tm // 2, 8))
    # Largest lane-aligned tn that fits the remaining budget.
    max_tn = (budget // 8 - tm * K) // (K + 1 + tm)
    tn = min(n_al, max(128, (max_tn // 128) * 128))

    # Single-block axes: use the exact dim (full-extent blocks are always legal
    # and avoid over-sized-block corner cases; raggedness only on multi-block axes).
    if tm >= M:
        tm = M
    if tn >= N:
        tn = N
    return tm, tn


def _mlpdec_kernel(x_ref, w_ref, b_ref, alpha_ref, o_ref):
    # x_ref: (tm, K)  w_ref: (K, tn)  b_ref: (1, tn)  alpha_ref: (1, 1) in SMEM.
    y = jnp.dot(x_ref[...], w_ref[...], preferred_element_type=jnp.float32)
    y = y + b_ref[...]                      # broadcast bias over rows
    alpha = alpha_ref[0, 0]                 # single-parameter PReLU
    o_ref[...] = jnp.where(y > 0, y, alpha * y).astype(o_ref.dtype)


@functools.partial(jax.jit, static_argnames=("out_shape", "tile_m"))
def mlpdec_forward(x, weight_kn, bias, alpha, out_shape, *, tile_m=1024):
    """
    x         : (B, S, C_in) float32
    weight_kn : (C_in, N)    float32  (PyTorch weight.T, prepared once at load time)
    bias      : (N,)         float32
    alpha     : scalar       float32  (PReLU parameter)
    out_shape : (H, W) with H * W == N
    returns   : (B, S, H, W) float32
    """
    B, S, K = x.shape
    H, W = out_shape
    N = H * W
    assert weight_kn.shape == (K, N)

    M = B * S
    x2d = x.reshape(M, K)                   # contiguous: no HBM copy
    b2d = bias.reshape(1, N)
    alpha2d = jnp.asarray(alpha, jnp.float32).reshape(1, 1)

    budget = _vmem_budget_bytes()
    tm, tn = _select_tiles(M, K, N, tile_m, budget)
    gm, gn = pl.cdiv(M, tm), pl.cdiv(N, tn)

    # Put whichever operand would be re-streamed more from HBM on the slow
    # (outer) grid axis so it is only fetched once.
    n_outer = (gn > 1) and (gn * M * K < gm * N * K)
    if n_outer:
        grid = (gn, gm)
        x_map = lambda j, i: (i, 0)
        w_map = lambda j, i: (0, j)
        b_map = lambda j, i: (0, j)
        o_map = lambda j, i: (i, j)
    else:
        grid = (gm, gn)
        x_map = lambda i, j: (i, 0)
        w_map = lambda i, j: (0, j)
        b_map = lambda i, j: (0, j)
        o_map = lambda i, j: (i, j)

    cost = pl.CostEstimate(
        flops=2 * M * K * N,
        transcendentals=0,
        bytes_accessed=4 * (M * K + K * N + M * N),
    )

    out2d = pl.pallas_call(
        _mlpdec_kernel,
        out_shape=jax.ShapeDtypeStruct((M, N), x.dtype),
        grid_spec=pltpu.PrefetchScalarGridSpec(
            num_scalar_prefetch=0,
            grid=grid,
            in_specs=[
                pl.BlockSpec((tm, K), x_map),                       # x tile
                pl.BlockSpec((K, tn), w_map),                       # W tile (K, N)
                pl.BlockSpec((1, tn), b_map),                       # bias tile
                pl.BlockSpec(memory_space=pltpu.MemorySpace.SMEM),  # alpha scalar
            ],
            out_specs=pl.BlockSpec((tm, tn), o_map),
        ),
        compiler_params=pltpu.CompilerParams(
            dimension_semantics=("parallel", "parallel"),
            vmem_limit_bytes=budget,
        ),
        cost_estimate=cost,
    )(x2d, weight_kn, b2d, alpha2d)

    return out2d.reshape(B, S, H, W)        # contiguous: no HBM copy


def _reference(x, weight_kn, bias, alpha, out_shape):
    B, S, K = x.shape
    H, W = out_shape
    y = jnp.einsum("bsk,kn->bsn", x, weight_kn) + bias
    y = jnp.where(y > 0, y, alpha * y)
    return y.reshape(B, S, H, W)


def _run_case(key, B, S, C_IN, OUT_SHAPE):
    N = OUT_SHAPE[0] * OUT_SHAPE[1]
    kx, kw, kb = jax.random.split(key, 3)
    x = jax.random.normal(kx, (B, S, C_IN), dtype=jnp.float32)
    bound = 1.0 / (C_IN ** 0.5)
    # nn.Linear parameters in their native PyTorch (N, K) layout ...
    weight_nk = jax.random.uniform(kw, (N, C_IN), jnp.float32, -bound, bound)
    bias = jax.random.uniform(kb, (N,), jnp.float32, -bound, bound)
    alpha = jnp.float32(0.25)               # nn.PReLU default init
    # ... transposed ONCE at parameter-prep time to the kernel's (K, N) layout.
    weight_kn = jnp.asarray(weight_nk.T)

    out = mlpdec_forward(x, weight_kn, bias, alpha, OUT_SHAPE)
    out = jax.block_until_ready(out)

    ref = _reference(x, weight_kn, bias, alpha, OUT_SHAPE)
    assert out.shape == (B, S, *OUT_SHAPE), out.shape
    assert jnp.allclose(out, ref, atol=1e-4, rtol=1e-4), "mismatch vs reference"


if __name__ == "__main__":
    key = jax.random.PRNGKey(0)
    k0, k1, k2 = jax.random.split(key, 3)

    # Small shapes consistent with the module:
    #   in_channels = 128, out_shape = (8, 16) -> Linear(128, 128), M = 16
    _run_case(k0, B=2, S=8, C_IN=128, OUT_SHAPE=(8, 16))

    # Non-aligned M (150) and non-128-multiple N (240): ragged-block paths.
    _run_case(k1, B=3, S=50, C_IN=96, OUT_SHAPE=(12, 20))

    # Multi-step M grid (M = 1200 -> two tm=1024 steps, last one ragged).
    _run_case(k2, B=4, S=300, C_IN=128, OUT_SHAPE=(8, 16))

    print("KERNEL_OK")
</pallas_src>

<mosaic_0001>
module attributes {stable_mosaic.version = 11 : i64} {
  func.func @_mlpdec_kernel(%arg0: i32, %arg1: i32, %arg2: memref<16x128xf32, #tpu.memory_space<vmem>>, %arg3: memref<128x128xf32, #tpu.memory_space<vmem>>, %arg4: memref<1x128xf32, #tpu.memory_space<vmem>>, %arg5: memref<1x1xf32, #tpu.memory_space<smem>>, %arg6: memref<16x128xf32, #tpu.memory_space<vmem>>) attributes {dimension_semantics = [#tpu.dimension_semantics<parallel>, #tpu.dimension_semantics<parallel>], iteration_bounds = array<i64: 1, 1>, scalar_prefetch = 0 : i64, scratch_operands = 0 : i64, tpu.core_type = #tpu.core_type<tc>, window_params = [{transform_indices = @transform_0, window_bounds = array<i64: 16, 128>}, {transform_indices = @transform_1, window_bounds = array<i64: 128, 128>}, {transform_indices = @transform_2, window_bounds = array<i64: 1, 128>}, {transform_indices = @transform_3, window_bounds = array<i64: 1, 1>}, {transform_indices = @transform_4, window_bounds = array<i64: 16, 128>}]} {
    %c0 = arith.constant 0 : index
    %c0_0 = arith.constant 0 : index
    %0 = vector.load %arg2[%c0, %c0_0] : memref<16x128xf32, #tpu.memory_space<vmem>>, vector<16x128xf32>
    %c0_1 = arith.constant 0 : index
    %c0_2 = arith.constant 0 : index
    %1 = vector.load %arg3[%c0_1, %c0_2] : memref<128x128xf32, #tpu.memory_space<vmem>>, vector<128x128xf32>
    %cst = arith.constant dense<0.000000e+00> : vector<16x128xf32>
    %2 = tpu.matmul %0, %1, %cst {dimension_numbers = #tpu.dot_dimension_numbers<[1], [0], [0], [1], [0, 0, 1, 1], [], []>} : vector<16x128xf32>, vector<128x128xf32>, vector<16x128xf32> -> vector<16x128xf32>
    %c0_3 = arith.constant 0 : index
    %c0_4 = arith.constant 0 : index
    %3 = vector.load %arg4[%c0_3, %c0_4] : memref<1x128xf32, #tpu.memory_space<vmem>>, vector<1x128xf32>
    %4 = vector.broadcast %3 : vector<1x128xf32> to vector<16x128xf32>
    %5 = arith.addf %2, %4 : vector<16x128xf32>
    %c0_5 = arith.constant 0 : index
    %c0_6 = arith.constant 0 : index
    %6 = memref.load %arg5[%c0_5, %c0_6] : memref<1x1xf32, #tpu.memory_space<smem>>
    %cst_7 = arith.constant 0.000000e+00 : f32
    %7 = vector.broadcast %cst_7 : f32 to vector<16x128xf32>
    %8 = arith.cmpf ogt, %5, %7 : vector<16x128xf32>
    %9 = vector.broadcast %6 : f32 to vector<16x128xf32>
    %10 = arith.mulf %9, %5 : vector<16x128xf32>
    %11 = arith.select %8, %5, %10 : vector<16x128xi1>, vector<16x128xf32>
    %c0_8 = arith.constant 0 : index
    %c0_9 = arith.constant 0 : index
    %12 = vector.load %arg6[%c0_8, %c0_9] : memref<16x128xf32, #tpu.memory_space<vmem>>, vector<16x128xf32>
    tpu.vector_store %arg6[%c0_8, %c0_9], %11 {strides = array<i32>} : memref<16x128xf32, #tpu.memory_space<vmem>>, vector<16x128xf32>,
    return
  }
  func.func @transform_0(%arg0: i32, %arg1: i32) -> (i32, i32) {
    %c0_i32 = arith.constant 0 : i32
    %c0_i32_0 = arith.constant 0 : i32
    return %arg0, %c0_i32 : i32, i32
  }
  func.func @transform_1(%arg0: i32, %arg1: i32) -> (i32, i32) {
    %c0_i32 = arith.constant 0 : i32
    %c0_i32_0 = arith.constant 0 : i32
    return %c0_i32, %arg1 : i32, i32
  }
  func.func @transform_2(%arg0: i32, %arg1: i32) -> (i32, i32) {
    %c0_i32 = arith.constant 0 : i32
    %c0_i32_0 = arith.constant 0 : i32
    return %c0_i32, %arg1 : i32, i32
  }
  func.func @transform_3(%arg0: i32, %arg1: i32) -> (i32, i32) {
    %c0_i32 = arith.constant 0 : i32
    %c0_i32_0 = arith.constant 0 : i32
    %c0_i32_1 = arith.constant 0 : i32
    return %c0_i32, %c0_i32_0 : i32, i32
  }
  func.func @transform_4(%arg0: i32, %arg1: i32) -> (i32, i32) {
    %c0_i32 = arith.constant 0 : i32
    return %arg0, %arg1 : i32, i32
  }
}

</mosaic_0001>

<bundles_post_ra>
// kernel: mlpdec_forward.1
= control target key start
LH: loop header
LB: loop body
LE: loop exit
PB: predicated region body
PF: predicated region fallthrough
CT: control target
= control target key end

     0   :  { %10 = vsyncpa [#allocation4], 0  ;;  %s365_s0 = inlined_call_operand.hbm [shape: f32[16,128], index: 0, kind: input, shape index: {}]   ;;  %s366_s1 = inlined_call_operand.hbm [shape: f32[128,128], index: 1, kind: input, shape index: {}]   ;;  %s367_s2 = inlined_call_operand.vmem [shape: f32[1,128], index: 2, kind: input, shape index: {}]   ;;  %s368_s3 = inlined_call_operand.<no memory space> [shape: f32[1,1], index: 3, kind: input, shape index: {}]   ;;  %s369_s4 = inlined_call_operand.vmem [shape: f32[16,128], index: 4, kind: output, shape index: {}]  }
   0x1   :  { %11 = vsyncpa [#allocation6], 0  ;;  %s300_s15 = smov [#allocation3]   ;;  %s252_s19 = scalar_lea.hbm %s365_s0, 256 }
   0x2   :  { %s17_s16 = sshll.u32 %s300_s15, 4  ;;  %p253_p0 = scmp.ne.s32.totalorder %s365_s0, %s252_s19  ;;  %s18_s16 = int_to_ptr.vmem [resolvable:$true] %s17_s16 }
   0x3   :  { %p256_p1 = scmp.lt.u32.totalorder %s252_s19, %s365_s0 }
   0x5   :  { %p258_p2 = pnand %p256_p1, %p253_p0 }
   0x7   :  { %261 = shalt.err (!%p258_p2)
}
   0x8   :  { %s262_s24 = scalar_lea.vmem %s18_s16, 256  ;;  %p267_p4 = scmp.lt.s32.totalorder %s18_s16, %s18_s16 }
   0x9   :  { %p263_p3 = scmp.ne.s32.totalorder %s18_s16, %s262_s24  ;;  %p268_p5 = scmp.lt.s32.totalorder %s262_s24, %s262_s24 }
   0xb   :  { %p269_p6 = por %p268_p5, %p267_p4 }
   0xd   :  { %p270_p7 = pnand %p269_p6, %p263_p3 }
   0xf   :  { %273 = shalt.err (!%p270_p7)
}
  0x10   :  { %s301_s25 = smov 128   ;;  %s302_s26 = smov 8  }
  0x11   :  { %23 = dma.hbm_to_vmem [thread:$0]  %s365_s0, 256, %s18_s16, [#allocation4], %s301_s25, %s301_s25, %s302_s26  }
  0x12   :  { %s303_s29 = smov [#allocation5]   ;;  %s274_s7 = scalar_lea.hbm %s366_s1, 2048 }
  0x13   :  { %s29_s30 = sshll.u32 %s303_s29, 4  ;;  %p275_p8 = scmp.ne.s32.totalorder %s366_s1, %s274_s7  ;;  %s30_s30 = int_to_ptr.vmem [resolvable:$true] %s29_s30 }
  0x14   :  { %p278_p9 = scmp.lt.u32.totalorder %s274_s7, %s366_s1 }
  0x16   :  { %p280_p10 = pnand %p278_p9, %p275_p8 }
  0x18   :  { %283 = shalt.err (!%p280_p10)
}
  0x19   :  { %s284_s12 = scalar_lea.vmem %s30_s30, 2048  ;;  %p289_p12 = scmp.lt.s32.totalorder %s30_s30, %s30_s30 }
  0x1a   :  { %p285_p11 = scmp.ne.s32.totalorder %s30_s30, %s284_s12  ;;  %p290_p13 = scmp.lt.s32.totalorder %s284_s12, %s284_s12 }
  0x1c   :  { %p291_p0 = por %p290_p13, %p289_p12 }
  0x1e   :  { %p292_p1 = pnand %p291_p0, %p285_p11 }
  0x20   :  { %295 = shalt.err (!%p292_p1)
}
  0x21   :  { %35 = dma.hbm_to_vmem [thread:$0]  %s366_s1, 2048, %s30_s30, [#allocation6], %s301_s25, %s301_s25, %s302_s26  }
  0x22   :  { %296 = dma.done.wait [#allocation4], 256  }
  0x23   :  { %297 = vsyncadd [#allocation4], 4294967040 }
  0x24   :  { %298 = dma.done.wait [#allocation6], 2048  }
  0x25   :  { %299 = vsyncadd [#allocation6], 4294965248  ;;  %v48_v0 = vld [vmem:[#allocation5] sm:$0xff]  ;;  %v49_v1 = vld [vmem:[#allocation5 + $0x8] sm:$0xff]  ;;  %v149_v28 = vstv %s368_s3 }
  0x26   :  { %v50_v2 = vld [vmem:[#allocation5 + $0x10] sm:$0xff]  ;;  %v216_v3 = vpack.c.bf16 %v49_v1, %v48_v0  ;;  %v51_v4 = vld [vmem:[#allocation5 + $0x18] sm:$0xff]  ;;  %v52_v6 = vld [vmem:[#allocation5 + $0x20] sm:$0xff] }
  0x27   :  { %v220_v5 = vpack.c.bf16 %v51_v4, %v50_v2  ;;  %v53_v7 = vld [vmem:[#allocation5 + $0x28] sm:$0xff]  ;;  %v46_v9 = vld [vmem:[#allocation3] sm:$0xff]  ;;  %v55_v11 = vld [vmem:[#allocation5 + $0x38] sm:$0xff] }
  0x28   :  { %217 = vmatprep.subr.bf16.mxu0 %v216_v3  ;;  %v224_v8 = vpack.c.bf16 %v53_v7, %v52_v6  ;;  %v54_v10 = vld [vmem:[#allocation5 + $0x30] sm:$0xff]  ;;  %213 = vmatprep.mubr.f32.mxu0 %v46_v9  ;;  %v56_v13 = vld [vmem:[#allocation5 + $0x40] sm:$0xff]  ;;  %v57_v14 = vld [vmem:[#allocation5 + $0x48] sm:$0xff] }
  0x29   :  { %219 = vmatpush3.bf16.msra.mxu0 %v216_v3  ;;  %v228_v12 = vpack.c.bf16 %v55_v11, %v54_v10  ;;  %v232_v15 = vpack.c.bf16 %v57_v14, %v56_v13  ;;  %v58_v16 = vld [vmem:[#allocation5 + $0x50] sm:$0xff]  ;;  %v59_v17 = vld [vmem:[#allocation5 + $0x58] sm:$0xff]  ;;  %v60_v19 = vld [vmem:[#allocation5 + $0x60] sm:$0xff] }
  0x2a   :  { %221 = vmatprep.subr.bf16.mxu0 %v220_v5  ;;  %v236_v18 = vpack.c.bf16 %v59_v17, %v58_v16  ;;  %v61_v20 = vld [vmem:[#allocation5 + $0x68] sm:$0xff]  ;;  %v62_v22 = vld [vmem:[#allocation5 + $0x70] sm:$0xff]  ;;  %v63_v23 = vld [vmem:[#allocation5 + $0x78] sm:$0xff] }
  0x2b   :  { %v240_v21 = vpack.c.bf16 %v61_v20, %v60_v19  ;;  %v244_v24 = vpack.c.bf16 %v63_v23, %v62_v22  ;;  %v47_v25 = vld [vmem:[#allocation3 + $0x8] sm:$0xff]  ;;  %v162_v26 = vld [vmem:[%s367_s2] ss:$0 sm:$0xff] }
  0x2d   :  { %223 = vmatpush3.bf16.msra.mxu0 %v220_v5 }
  0x2e   :  { %225 = vmatprep.subr.bf16.mxu0 %v224_v8 }
  0x31   :  { %227 = vmatpush3.bf16.msra.mxu0 %v224_v8 }
  0x32   :  { %229 = vmatprep.subr.bf16.mxu0 %v228_v12 }
  0x35   :  { %231 = vmatpush3.bf16.msra.mxu0 %v228_v12 }
  0x36   :  { %233 = vmatprep.subr.bf16.mxu0 %v232_v15 }
  0x39   :  { %235 = vmatpush3.bf16.msra.mxu0 %v232_v15 }
  0x3a   :  { %237 = vmatprep.subr.bf16.mxu0 %v236_v18 }
  0x3d   :  { %239 = vmatpush3.bf16.msra.mxu0 %v236_v18 }
  0x3e   :  { %241 = vmatprep.subr.bf16.mxu0 %v240_v21 }
  0x41   :  { %243 = vmatpush3.bf16.msra.mxu0 %v240_v21 }
  0x42   :  { %245 = vmatprep.subr.bf16.mxu0 %v244_v24 }
  0x45   :  { %247 = vmatpush3.bf16.msra.mxu0 %v244_v24 }
  0x48   :  { %214 = vmatmul.mubr.f32.vlgmr.msra.gmra.mrb[0].mxu0 %v47_v25 }
 0x11b   :  { %v215_v27 = vpop.f32.mrb[0].mxu0 }
 0x11c   :  { %v143_v29 = vadd.f32 %v215_v27, %v162_v26  ;;  %v137_v30 = vpop.f32.mrb[1].mxu0 }
 0x11d   :  { %v138_v31 = vadd.f32 %v162_v26, %v137_v30 }
 0x11e   :  { %vm148_vm0 = vcmp.gt.f32.partialorder %v143_v29, 0.0  ;;  %v151_v32 = vmul.f32 %v149_v28, %v143_v29 }
 0x11f   :  { %vm147_vm1 = vcmp.gt.f32.partialorder %v138_v31, 0.0  ;;  %v150_v33 = vmul.f32 %v149_v28, %v138_v31 }
 0x120   :  { %v153_v34 = vsel %vm148_vm0, %v143_v29, %v151_v32 }
 0x121   :  { %155 = vst [vmem:[%s369_s4 + $0x8] sm:$0xff] %v153_v34  ;;  %v152_v35 = vsel %vm147_vm1, %v138_v31, %v150_v33 }
 0x122   :  { %154 = vst [vmem:[%s369_s4] sm:$0xff] %v152_v35 }
 0x123   :  { %160 = vsyncpa [#allocation4], 1 }
 0x124   :  { %161 = vsyncpa [#allocation6], 1 }

</bundles_post_ra>
